<compile_context>
chip_gen: v5e
topology: v5e:2x2
jax: 0.10.0
libtpu: 0.0.40
codegen_flags: <defaults>
</compile_context>

<pallas_src>
import functools

import jax
import jax.numpy as jnp
from jax import lax
from jax.experimental import pallas as pl
from jax.experimental.pallas import tpu as pltpu

NEG_SLOPE = 0.01  # nn.LeakyReLU default
BN_EPS = 1e-5


def _leaky(x):
    return jnp.where(x > 0, x, NEG_SLOPE * x)


def _round_up(x, m):
    return (x + m - 1) // m * m


# --------------------------- Pallas kernel ---------------------------
def res_block_kernel(x_ref, mask_ref, w1s_ref, b1s_ref, w2_ref, b2_ref,
                     o_ref, xcol_ref, *, W):
    """One grid step = B whole images, channel-major, pixels concatenated on lanes.

    x_ref:    (Cin_p,  L)            L = B * HWp (lane-dense)
    mask_ref: (9,      L)            precomputed per-tap SAME-padding border masks
    w1s_ref:  (2*Cout_p, 9*Cin_p)    [conv1+BN1 ; 1x1 shortcut+BN in center-tap block]
    b1s_ref:  (2*Cout_p, 1)
    w2_ref:   (Cout_p, 9*Cout_p)     conv2 + BN2
    b2_ref:   (Cout_p, 1)
    o_ref:    (Cout_p, L)            lane-dense output slab
    xcol_ref: (9*max(Cin_p,Cout_p), L)  shared im2col scratch (conv1 then conv2)
    """
    cin_p = x_ref.shape[0]
    cout_p = o_ref.shape[0]
    L = x_ref.shape[1]

    # Tap shifts for a 3x3 "same" convolution (tap t=4 is the center).
    shifts = tuple((kh - 1) * W + (kw - 1) for kh in range(3) for kw in range(3))

    def im2col(src, c):
        # src: (c, L), already in the scratch / MXU dtype.
        for t, shift in enumerate(shifts):
            rows = pl.ds(t * c, c)
            if shift == 0:
                # Center tap: every in-image position is valid -> no roll, no mask.
                xcol_ref[rows, :] = src
            else:
                shifted = pltpu.roll(src, (-shift) % L, axis=1)   # XLU slot
                xcol_ref[rows, :] = shifted * mask_ref[pl.ds(t, 1), :]

    x = x_ref[...]  # (Cin_p, L)

    # ---- conv1 (3x3) + BN1 fused with the 1x1 shortcut conv + BN: ONE matmul ----
    im2col(x, cin_p)
    fused = jnp.dot(w1s_ref[...], xcol_ref[pl.ds(0, 9 * cin_p), :],
                    preferred_element_type=jnp.float32) + b1s_ref[...]
    t1 = _leaky(fused[:cout_p, :])      # conv1 -> BN1 -> LeakyReLU   (f32)
    res = fused[cout_p:, :]             # shortcut 1x1 conv -> BN     (f32)

    # ---- conv2 (3x3) + BN2 ----
    im2col(t1.astype(xcol_ref.dtype), cout_p)
    t2 = jnp.dot(w2_ref[...], xcol_ref[pl.ds(0, 9 * cout_p), :],
                 preferred_element_type=jnp.float32) + b2_ref[...]

    o_ref[...] = _leaky(t2 + res).astype(o_ref.dtype)


# --------------------------- wrapper / glue ---------------------------
def _fold_bn(w_hwio, conv_b, gamma, beta, mean, var):
    """Fold eval-mode BatchNorm into conv weight (HWIO, Cout last) and bias."""
    scale = gamma / jnp.sqrt(var + BN_EPS)
    w_f = w_hwio * scale
    b_f = (conv_b - mean) * scale + beta
    return w_f.astype(jnp.float32), b_f.astype(jnp.float32)


def _pack_bias(b, cout_p):
    return jnp.pad(b, (0, cout_p - b.shape[0])).reshape(cout_p, 1).astype(jnp.float32)


def _pack_conv3x3(w_hwio, cin_p, cout_p, dtype):
    # (3,3,Cin,Cout) -> (Cout_p, 9*Cin_p), tap-major / channel-minor K (matches im2col).
    _, _, cin, cout = w_hwio.shape
    w = jnp.pad(w_hwio, ((0, 0), (0, 0), (0, cin_p - cin), (0, cout_p - cout)))
    return w.reshape(9 * cin_p, cout_p).T.astype(dtype)


def _pack_fused_conv1_shortcut(w1_hwio, ws_hwio, cin_p, cout_p, dtype):
    """Stack the 1x1 shortcut (center-tap column block only) under conv1's weights."""
    w1r = _pack_conv3x3(w1_hwio, cin_p, cout_p, jnp.float32)            # (Cout_p, 9*Cin_p)
    cin, cout = ws_hwio.shape[2], ws_hwio.shape[3]
    wsp = jnp.pad(ws_hwio, ((0, 0), (0, 0), (0, cin_p - cin), (0, cout_p - cout)))
    wsr = wsp.reshape(cin_p, cout_p).T                                   # (Cout_p, Cin_p)
    ws_full = jnp.zeros((cout_p, 9 * cin_p), jnp.float32)
    ws_full = ws_full.at[:, 4 * cin_p:5 * cin_p].set(wsr)                # center tap (t=4)
    return jnp.concatenate([w1r, ws_full], axis=0).astype(dtype)         # (2*Cout_p, 9*Cin_p)


def _border_masks(H, W, hw_p, n_imgs, dtype):
    """(9, n_imgs*hw_p) per-tap validity masks (SAME padding + pixel-pad), hoisted."""
    HW = H * W
    pix = jnp.arange(hw_p, dtype=jnp.int32)
    h = pix // W
    w = pix - h * W
    in_img = pix < HW
    rows = []
    for kh in range(3):
        for kw in range(3):
            dh, dw = kh - 1, kw - 1
            valid = (in_img & (h + dh >= 0) & (h + dh < H)
                     & (w + dw >= 0) & (w + dw < W))
            rows.append(valid)
    m = jnp.stack(rows, axis=0).astype(dtype)      # (9, hw_p)
    return jnp.tile(m, (1, n_imgs))                # (9, n_imgs * hw_p)


def res_block_forward(x_nchw, params, *, mxu_dtype=jnp.bfloat16, images_per_step=None):
    """x_nchw: (N, Cin, H, W) float32 -> (N, Cout, H, W) float32.

    mxu_dtype: MXU operand dtype (bf16 default: valid on v5e/v6e/v7x, halves im2col
    scratch and DMA bytes; accumulation / elementwise math stays f32).  Pass
    jnp.float32 for bit-tight results vs the XLA reference.
    images_per_step: images per grid step (default keeps >= 2 parallel grid steps
    so both v7x TensorCores are fed; raise it on single-TC v5e/v6e to amortize
    per-step overhead further).
    """
    N, Cin, H, W = x_nchw.shape
    HW = H * W
    hw_p = _round_up(HW, 128)      # lane-dense per-image pixel axis

    w1, b1 = _fold_bn(params["w1"], params["cb1"], params["g1"], params["be1"],
                      params["m1"], params["v1"])
    w2, b2 = _fold_bn(params["w2"], params["cb2"], params["g2"], params["be2"],
                      params["m2"], params["v2"])
    ws, bs = _fold_bn(params["ws"], params["cbs"], params["gs"], params["bes"],
                      params["ms"], params["vs"])
    Cout = w1.shape[-1]

    cin_p = _round_up(Cin, 8)
    cout_p = _round_up(Cout, 8)

    # Images per grid step.
    if images_per_step is None:
        B = max(1, N // 2)
    else:
        B = max(1, min(int(images_per_step), N))
    itemsize = jnp.dtype(mxu_dtype).itemsize
    # Keep the shared im2col scratch comfortably inside every chip's scoped VMEM.
    while B > 1 and 9 * max(cin_p, cout_p) * B * hw_p * itemsize > (8 << 20):
        B = (B + 1) // 2
    n_pad = _round_up(N, B)
    n_steps = n_pad // B
    L = B * hw_p

    # NCHW -> channel-major (Cin_p, N_pad*hw_p): pixels stay last (lane-dense); the
    # only data movement is a channel/pixel zero-pad and a lane-preserving transpose
    # of the image axis.  No spatial halo pad, no NHWC transpose.
    x = x_nchw.reshape(N, Cin, HW)
    x = jnp.pad(x, ((0, n_pad - N), (0, cin_p - Cin), (0, hw_p - HW)))
    x = jnp.transpose(x, (1, 0, 2)).reshape(cin_p, n_pad * hw_p).astype(mxu_dtype)

    masks = _border_masks(H, W, hw_p, B, mxu_dtype)                         # (9, L)
    w1s = _pack_fused_conv1_shortcut(w1, ws, cin_p, cout_p, mxu_dtype)      # (2*Cout_p, 9*Cin_p)
    b1s = jnp.concatenate([_pack_bias(b1, cout_p), _pack_bias(bs, cout_p)], axis=0)
    w2r = _pack_conv3x3(w2, cout_p, cout_p, mxu_dtype)                      # (Cout_p, 9*Cout_p)
    b2r = _pack_bias(b2, cout_p)

    kernel = functools.partial(res_block_kernel, W=W)

    out = pl.pallas_call(
        kernel,
        out_shape=jax.ShapeDtypeStruct((cout_p, n_pad * hw_p), jnp.float32),
        grid_spec=pltpu.PrefetchScalarGridSpec(
            num_scalar_prefetch=0,
            grid=(n_steps,),
            in_specs=[
                pl.BlockSpec((cin_p, L), lambda n: (0, n)),                 # x (per-step slab)
                pl.BlockSpec((9, L), lambda n: (0, 0)),                     # border masks
                pl.BlockSpec((2 * cout_p, 9 * cin_p), lambda n: (0, 0)),    # conv1 + shortcut
                pl.BlockSpec((2 * cout_p, 1), lambda n: (0, 0)),
                pl.BlockSpec((cout_p, 9 * cout_p), lambda n: (0, 0)),       # conv2
                pl.BlockSpec((cout_p, 1), lambda n: (0, 0)),
            ],
            out_specs=pl.BlockSpec((cout_p, L), lambda n: (0, n)),
            scratch_shapes=[
                pltpu.VMEM((9 * max(cin_p, cout_p), L), mxu_dtype),         # shared im2col
            ],
        ),
        compiler_params=pltpu.CompilerParams(
            dimension_semantics=("parallel",),
        ),
    )(x, masks, w1s, b1s, w2r, b2r)

    out = out.reshape(cout_p, n_pad, hw_p).transpose(1, 0, 2)   # (N_pad, Cout_p, hw_p)
    return out[:N, :Cout, :HW].reshape(N, Cout, H, W)


# ---------------- pure-JAX reference (for verification) ----------------
def _conv_nhwc(x, w_hwio, b):
    y = lax.conv_general_dilated(
        x, w_hwio, window_strides=(1, 1), padding="SAME",
        dimension_numbers=("NHWC", "HWIO", "NHWC"))
    return y + b


def res_block_ref(x_nchw, params):
    x = jnp.transpose(x_nchw, (0, 2, 3, 1))
    w1, b1 = _fold_bn(params["w1"], params["cb1"], params["g1"], params["be1"],
                      params["m1"], params["v1"])
    w2, b2 = _fold_bn(params["w2"], params["cb2"], params["g2"], params["be2"],
                      params["m2"], params["v2"])
    ws, bs = _fold_bn(params["ws"], params["cbs"], params["gs"], params["bes"],
                      params["ms"], params["vs"])
    residual = _conv_nhwc(x, ws, bs)
    out = _leaky(_conv_nhwc(x, w1, b1))
    out = _conv_nhwc(out, w2, b2)
    out = _leaky(out + residual)
    return jnp.transpose(out, (0, 3, 1, 2))


def init_params(key, cin, cout):
    ks = jax.random.split(key, 12)
    return {
        "w1": 0.1 * jax.random.normal(ks[0], (3, 3, cin, cout), jnp.float32),
        "cb1": 0.05 * jax.random.normal(ks[1], (cout,), jnp.float32),
        "w2": 0.1 * jax.random.normal(ks[2], (3, 3, cout, cout), jnp.float32),
        "cb2": 0.05 * jax.random.normal(ks[3], (cout,), jnp.float32),
        "ws": 0.1 * jax.random.normal(ks[4], (1, 1, cin, cout), jnp.float32),
        "cbs": 0.05 * jax.random.normal(ks[5], (cout,), jnp.float32),
        "g1": 1.0 + 0.1 * jax.random.normal(ks[6], (cout,), jnp.float32),
        "be1": 0.1 * jax.random.normal(ks[7], (cout,), jnp.float32),
        "m1": 0.1 * jax.random.normal(ks[8], (cout,), jnp.float32),
        "v1": 1.0 + 0.1 * jax.random.uniform(ks[9], (cout,), jnp.float32),
        "g2": 1.05 * jnp.ones((cout,), jnp.float32),
        "be2": 0.02 * jnp.ones((cout,), jnp.float32),
        "m2": 0.03 * jnp.ones((cout,), jnp.float32),
        "v2": 0.9 * jnp.ones((cout,), jnp.float32),
        "gs": 0.95 * jnp.ones((cout,), jnp.float32),
        "bes": -0.01 * jnp.ones((cout,), jnp.float32),
        "ms": 0.05 * jnp.ones((cout,), jnp.float32),
        "vs": 1.1 * jnp.ones((cout,), jnp.float32),
    }


if __name__ == "__main__":
    key = jax.random.PRNGKey(0)
    k_x, k_p = jax.random.split(key)

    # N=4 exercises batching (2 images per grid step) AND 2 parallel grid steps (v7x).
    N, Cin, Cout, H, W = 4, 4, 8, 16, 16
    x = jax.random.normal(k_x, (N, Cin, H, W), jnp.float32)  # NCHW input
    params = init_params(k_p, Cin, Cout)

    ref = jax.block_until_ready(res_block_ref(x, params))

    # f32 MXU operands: bit-tight verification against the XLA reference.
    out_f32 = jax.block_until_ready(
        res_block_forward(x, params, mxu_dtype=jnp.float32))
    assert out_f32.shape == (N, Cout, H, W)
    err_f32 = float(jnp.max(jnp.abs(out_f32 - ref)))
    assert jnp.allclose(out_f32, ref, atol=1e-4, rtol=1e-4), err_f32

    # Default (bf16 MXU operands, f32 accumulation / elementwise): loose check.
    out_bf16 = jax.block_until_ready(res_block_forward(x, params))
    err_bf16 = float(jnp.max(jnp.abs(out_bf16 - ref)))
    assert bool(jnp.all(jnp.isfinite(out_bf16))) and err_bf16 < 0.5, err_bf16

    print("KERNEL_OK")
</pallas_src>

<mosaic_0001>
module attributes {stable_mosaic.version = 11 : i64} {
  func.func @res_block_kernel(%arg0: i32, %arg1: memref<8x512xf32, #tpu.memory_space<vmem>>, %arg2: memref<9x512xf32, #tpu.memory_space<vmem>>, %arg3: memref<16x72xf32, #tpu.memory_space<vmem>>, %arg4: memref<16x1xf32, #tpu.memory_space<vmem>>, %arg5: memref<8x72xf32, #tpu.memory_space<vmem>>, %arg6: memref<8x1xf32, #tpu.memory_space<vmem>>, %arg7: memref<8x512xf32, #tpu.memory_space<vmem>>, %arg8: memref<72x512xf32, #tpu.memory_space<vmem>>) attributes {dimension_semantics = [#tpu.dimension_semantics<parallel>], iteration_bounds = array<i64: 2>, scalar_prefetch = 0 : i64, scratch_operands = 1 : i64, tpu.core_type = #tpu.core_type<tc>, window_params = [{transform_indices = @transform_0, window_bounds = array<i64: 8, 512>}, {pipeline_mode = #tpu.pipeline_mode<synchronous>, transform_indices = @transform_1, window_bounds = array<i64: 9, 512>}, {pipeline_mode = #tpu.pipeline_mode<synchronous>, transform_indices = @transform_2, window_bounds = array<i64: 16, 72>}, {pipeline_mode = #tpu.pipeline_mode<synchronous>, transform_indices = @transform_3, window_bounds = array<i64: 16, 1>}, {pipeline_mode = #tpu.pipeline_mode<synchronous>, transform_indices = @transform_4, window_bounds = array<i64: 8, 72>}, {pipeline_mode = #tpu.pipeline_mode<synchronous>, transform_indices = @transform_5, window_bounds = array<i64: 8, 1>}, {transform_indices = @transform_6, window_bounds = array<i64: 8, 512>}]} {
    %c0 = arith.constant 0 : index
    %c0_0 = arith.constant 0 : index
    %0 = vector.load %arg1[%c0, %c0_0] : memref<8x512xf32, #tpu.memory_space<vmem>>, vector<8x512xf32>
    %c17_i32 = arith.constant 17 : i32
    %1 = tpu.dynamic_rotate %0 by %c17_i32 dim 1 : vector<8x512xf32>, i32 -> vector<8x512xf32>
    %c0_1 = arith.constant 0 : index
    %c0_2 = arith.constant 0 : index
    %2 = vector.load %arg2[%c0_1, %c0_2] : memref<9x512xf32, #tpu.memory_space<vmem>>, vector<1x512xf32>
    %3 = vector.broadcast %2 : vector<1x512xf32> to vector<8x512xf32>
    %4 = arith.mulf %1, %3 : vector<8x512xf32>
    %c0_3 = arith.constant 0 : index
    %c0_4 = arith.constant 0 : index
    %5 = vector.load %arg8[%c0_3, %c0_4] : memref<72x512xf32, #tpu.memory_space<vmem>>, vector<8x512xf32>
    tpu.vector_store %arg8[%c0_3, %c0_4], %4 {strides = array<i32>} : memref<72x512xf32, #tpu.memory_space<vmem>>, vector<8x512xf32>,
    %c16_i32 = arith.constant 16 : i32
    %6 = tpu.dynamic_rotate %0 by %c16_i32 dim 1 : vector<8x512xf32>, i32 -> vector<8x512xf32>
    %c1 = arith.constant 1 : index
    %c0_5 = arith.constant 0 : index
    %7 = vector.load %arg2[%c1, %c0_5] : memref<9x512xf32, #tpu.memory_space<vmem>>, vector<1x512xf32>
    %8 = vector.broadcast %7 : vector<1x512xf32> to vector<8x512xf32>
    %9 = arith.mulf %6, %8 : vector<8x512xf32>
    %c8 = arith.constant 8 : index
    %c0_6 = arith.constant 0 : index
    %10 = vector.load %arg8[%c8, %c0_6] : memref<72x512xf32, #tpu.memory_space<vmem>>, vector<8x512xf32>
    tpu.vector_store %arg8[%c8, %c0_6], %9 {strides = array<i32>} : memref<72x512xf32, #tpu.memory_space<vmem>>, vector<8x512xf32>,
    %c15_i32 = arith.constant 15 : i32
    %11 = tpu.dynamic_rotate %0 by %c15_i32 dim 1 : vector<8x512xf32>, i32 -> vector<8x512xf32>
    %c2 = arith.constant 2 : index
    %c0_7 = arith.constant 0 : index
    %12 = vector.load %arg2[%c2, %c0_7] : memref<9x512xf32, #tpu.memory_space<vmem>>, vector<1x512xf32>
    %13 = vector.broadcast %12 : vector<1x512xf32> to vector<8x512xf32>
    %14 = arith.mulf %11, %13 : vector<8x512xf32>
    %c16 = arith.constant 16 : index
    %c0_8 = arith.constant 0 : index
    %15 = vector.load %arg8[%c16, %c0_8] : memref<72x512xf32, #tpu.memory_space<vmem>>, vector<8x512xf32>
    tpu.vector_store %arg8[%c16, %c0_8], %14 {strides = array<i32>} : memref<72x512xf32, #tpu.memory_space<vmem>>, vector<8x512xf32>,
    %c1_i32 = arith.constant 1 : i32
    %16 = tpu.dynamic_rotate %0 by %c1_i32 dim 1 : vector<8x512xf32>, i32 -> vector<8x512xf32>
    %c3 = arith.constant 3 : index
    %c0_9 = arith.constant 0 : index
    %17 = vector.load %arg2[%c3, %c0_9] : memref<9x512xf32, #tpu.memory_space<vmem>>, vector<1x512xf32>
    %18 = vector.broadcast %17 : vector<1x512xf32> to vector<8x512xf32>
    %19 = arith.mulf %16, %18 : vector<8x512xf32>
    %c24 = arith.constant 24 : index
    %c0_10 = arith.constant 0 : index
    %20 = vector.load %arg8[%c24, %c0_10] : memref<72x512xf32, #tpu.memory_space<vmem>>, vector<8x512xf32>
    tpu.vector_store %arg8[%c24, %c0_10], %19 {strides = array<i32>} : memref<72x512xf32, #tpu.memory_space<vmem>>, vector<8x512xf32>,
    %c32 = arith.constant 32 : index
    %c0_11 = arith.constant 0 : index
    %21 = vector.load %arg8[%c32, %c0_11] : memref<72x512xf32, #tpu.memory_space<vmem>>, vector<8x512xf32>
    tpu.vector_store %arg8[%c32, %c0_11], %0 {strides = array<i32>} : memref<72x512xf32, #tpu.memory_space<vmem>>, vector<8x512xf32>,
    %c511_i32 = arith.constant 511 : i32
    %22 = tpu.dynamic_rotate %0 by %c511_i32 dim 1 : vector<8x512xf32>, i32 -> vector<8x512xf32>
    %c5 = arith.constant 5 : index
    %c0_12 = arith.constant 0 : index
    %23 = vector.load %arg2[%c5, %c0_12] : memref<9x512xf32, #tpu.memory_space<vmem>>, vector<1x512xf32>
    %24 = vector.broadcast %23 : vector<1x512xf32> to vector<8x512xf32>
    %25 = arith.mulf %22, %24 : vector<8x512xf32>
    %c40 = arith.constant 40 : index
    %c0_13 = arith.constant 0 : index
    %26 = vector.load %arg8[%c40, %c0_13] : memref<72x512xf32, #tpu.memory_space<vmem>>, vector<8x512xf32>
    tpu.vector_store %arg8[%c40, %c0_13], %25 {strides = array<i32>} : memref<72x512xf32, #tpu.memory_space<vmem>>, vector<8x512xf32>,
    %c497_i32 = arith.constant 497 : i32
    %27 = tpu.dynamic_rotate %0 by %c497_i32 dim 1 : vector<8x512xf32>, i32 -> vector<8x512xf32>
    %c6 = arith.constant 6 : index
    %c0_14 = arith.constant 0 : index
    %28 = vector.load %arg2[%c6, %c0_14] : memref<9x512xf32, #tpu.memory_space<vmem>>, vector<1x512xf32>
    %29 = vector.broadcast %28 : vector<1x512xf32> to vector<8x512xf32>
    %30 = arith.mulf %27, %29 : vector<8x512xf32>
    %c48 = arith.constant 48 : index
    %c0_15 = arith.constant 0 : index
    %31 = vector.load %arg8[%c48, %c0_15] : memref<72x512xf32, #tpu.memory_space<vmem>>, vector<8x512xf32>
    tpu.vector_store %arg8[%c48, %c0_15], %30 {strides = array<i32>} : memref<72x512xf32, #tpu.memory_space<vmem>>, vector<8x512xf32>,
    %c496_i32 = arith.constant 496 : i32
    %32 = tpu.dynamic_rotate %0 by %c496_i32 dim 1 : vector<8x512xf32>, i32 -> vector<8x512xf32>
    %c7 = arith.constant 7 : index
    %c0_16 = arith.constant 0 : index
    %33 = vector.load %arg2[%c7, %c0_16] : memref<9x512xf32, #tpu.memory_space<vmem>>, vector<1x512xf32>
    %34 = vector.broadcast %33 : vector<1x512xf32> to vector<8x512xf32>
    %35 = arith.mulf %32, %34 : vector<8x512xf32>
    %c56 = arith.constant 56 : index
    %c0_17 = arith.constant 0 : index
    %36 = vector.load %arg8[%c56, %c0_17] : memref<72x512xf32, #tpu.memory_space<vmem>>, vector<8x512xf32>
    tpu.vector_store %arg8[%c56, %c0_17], %35 {strides = array<i32>} : memref<72x512xf32, #tpu.memory_space<vmem>>, vector<8x512xf32>,
    %c495_i32 = arith.constant 495 : i32
    %37 = tpu.dynamic_rotate %0 by %c495_i32 dim 1 : vector<8x512xf32>, i32 -> vector<8x512xf32>
    %c8_18 = arith.constant 8 : index
    %c0_19 = arith.constant 0 : index
    %38 = vector.load %arg2[%c8_18, %c0_19] : memref<9x512xf32, #tpu.memory_space<vmem>>, vector<1x512xf32>
    %39 = vector.broadcast %38 : vector<1x512xf32> to vector<8x512xf32>
    %40 = arith.mulf %37, %39 : vector<8x512xf32>
    %c64 = arith.constant 64 : index
    %c0_20 = arith.constant 0 : index
    %41 = vector.load %arg8[%c64, %c0_20] : memref<72x512xf32, #tpu.memory_space<vmem>>, vector<8x512xf32>
    tpu.vector_store %arg8[%c64, %c0_20], %40 {strides = array<i32>} : memref<72x512xf32, #tpu.memory_space<vmem>>, vector<8x512xf32>,
    %c0_21 = arith.constant 0 : index
    %c0_22 = arith.constant 0 : index
    %42 = vector.load %arg3[%c0_21, %c0_22] : memref<16x72xf32, #tpu.memory_space<vmem>>, vector<16x72xf32>
    %c0_23 = arith.constant 0 : index
    %c0_24 = arith.constant 0 : index
    %43 = vector.load %arg8[%c0_23, %c0_24] : memref<72x512xf32, #tpu.memory_space<vmem>>, vector<72x512xf32>
    %cst = arith.constant dense<0.000000e+00> : vector<16x512xf32>
    %44 = tpu.matmul %42, %43, %cst {dimension_numbers = #tpu.dot_dimension_numbers<[1], [0], [0], [1], [0, 0, 1, 1], [], []>} : vector<16x72xf32>, vector<72x512xf32>, vector<16x512xf32> -> vector<16x512xf32>
    %c0_25 = arith.constant 0 : index
    %c0_26 = arith.constant 0 : index
    %45 = vector.load %arg4[%c0_25, %c0_26] : memref<16x1xf32, #tpu.memory_space<vmem>>, vector<16x1xf32>
    %46 = vector.broadcast %45 : vector<16x1xf32> to vector<16x512xf32>
    %47 = arith.addf %44, %46 : vector<16x512xf32>
    %48 = vector.extract_strided_slice %47 {offsets = [0, 0], sizes = [8, 512], strides = [1, 1]} : vector<16x512xf32> to vector<8x512xf32>
    %cst_27 = arith.constant 0.000000e+00 : f32
    %49 = vector.broadcast %cst_27 : f32 to vector<8x512xf32>
    %50 = arith.cmpf ogt, %48, %49 : vector<8x512xf32>
    %cst_28 = arith.constant 0.00999999977 : f32
    %51 = vector.broadcast %cst_28 : f32 to vector<8x512xf32>
    %52 = arith.mulf %51, %48 : vector<8x512xf32>
    %53 = arith.select %50, %48, %52 : vector<8x512xi1>, vector<8x512xf32>
    %54 = vector.extract_strided_slice %47 {offsets = [8, 0], sizes = [8, 512], strides = [1, 1]} : vector<16x512xf32> to vector<8x512xf32>
    %c17_i32_29 = arith.constant 17 : i32
    %55 = tpu.dynamic_rotate %53 by %c17_i32_29 dim 1 : vector<8x512xf32>, i32 -> vector<8x512xf32>
    %c0_30 = arith.constant 0 : index
    %c0_31 = arith.constant 0 : index
    %56 = vector.load %arg2[%c0_30, %c0_31] : memref<9x512xf32, #tpu.memory_space<vmem>>, vector<1x512xf32>
    %57 = vector.broadcast %56 : vector<1x512xf32> to vector<8x512xf32>
    %58 = arith.mulf %55, %57 : vector<8x512xf32>
    %c0_32 = arith.constant 0 : index
    %c0_33 = arith.constant 0 : index
    %59 = vector.load %arg8[%c0_32, %c0_33] : memref<72x512xf32, #tpu.memory_space<vmem>>, vector<8x512xf32>
    tpu.vector_store %arg8[%c0_32, %c0_33], %58 {strides = array<i32>} : memref<72x512xf32, #tpu.memory_space<vmem>>, vector<8x512xf32>,
    %c16_i32_34 = arith.constant 16 : i32
    %60 = tpu.dynamic_rotate %53 by %c16_i32_34 dim 1 : vector<8x512xf32>, i32 -> vector<8x512xf32>
    %c1_35 = arith.constant 1 : index
    %c0_36 = arith.constant 0 : index
    %61 = vector.load %arg2[%c1_35, %c0_36] : memref<9x512xf32, #tpu.memory_space<vmem>>, vector<1x512xf32>
    %62 = vector.broadcast %61 : vector<1x512xf32> to vector<8x512xf32>
    %63 = arith.mulf %60, %62 : vector<8x512xf32>
    %c8_37 = arith.constant 8 : index
    %c0_38 = arith.constant 0 : index
    %64 = vector.load %arg8[%c8_37, %c0_38] : memref<72x512xf32, #tpu.memory_space<vmem>>, vector<8x512xf32>
    tpu.vector_store %arg8[%c8_37, %c0_38], %63 {strides = array<i32>} : memref<72x512xf32, #tpu.memory_space<vmem>>, vector<8x512xf32>,
    %c15_i32_39 = arith.constant 15 : i32
    %65 = tpu.dynamic_rotate %53 by %c15_i32_39 dim 1 : vector<8x512xf32>, i32 -> vector<8x512xf32>
    %c2_40 = arith.constant 2 : index
    %c0_41 = arith.constant 0 : index
    %66 = vector.load %arg2[%c2_40, %c0_41] : memref<9x512xf32, #tpu.memory_space<vmem>>, vector<1x512xf32>
    %67 = vector.broadcast %66 : vector<1x512xf32> to vector<8x512xf32>
    %68 = arith.mulf %65, %67 : vector<8x512xf32>
    %c16_42 = arith.constant 16 : index
    %c0_43 = arith.constant 0 : index
    %69 = vector.load %arg8[%c16_42, %c0_43] : memref<72x512xf32, #tpu.memory_space<vmem>>, vector<8x512xf32>
    tpu.vector_store %arg8[%c16_42, %c0_43], %68 {strides = array<i32>} : memref<72x512xf32, #tpu.memory_space<vmem>>, vector<8x512xf32>,
    %c1_i32_44 = arith.constant 1 : i32
    %70 = tpu.dynamic_rotate %53 by %c1_i32_44 dim 1 : vector<8x512xf32>, i32 -> vector<8x512xf32>
    %c3_45 = arith.constant 3 : index
    %c0_46 = arith.constant 0 : index
    %71 = vector.load %arg2[%c3_45, %c0_46] : memref<9x512xf32, #tpu.memory_space<vmem>>, vector<1x512xf32>
    %72 = vector.broadcast %71 : vector<1x512xf32> to vector<8x512xf32>
    %73 = arith.mulf %70, %72 : vector<8x512xf32>
    %c24_47 = arith.constant 24 : index
    %c0_48 = arith.constant 0 : index
    %74 = vector.load %arg8[%c24_47, %c0_48] : memref<72x512xf32, #tpu.memory_space<vmem>>, vector<8x512xf32>
    tpu.vector_store %arg8[%c24_47, %c0_48], %73 {strides = array<i32>} : memref<72x512xf32, #tpu.memory_space<vmem>>, vector<8x512xf32>,
    %c32_49 = arith.constant 32 : index
    %c0_50 = arith.constant 0 : index
    %75 = vector.load %arg8[%c32_49, %c0_50] : memref<72x512xf32, #tpu.memory_space<vmem>>, vector<8x512xf32>
    tpu.vector_store %arg8[%c32_49, %c0_50], %53 {strides = array<i32>} : memref<72x512xf32, #tpu.memory_space<vmem>>, vector<8x512xf32>,
    %c511_i32_51 = arith.constant 511 : i32
    %76 = tpu.dynamic_rotate %53 by %c511_i32_51 dim 1 : vector<8x512xf32>, i32 -> vector<8x512xf32>
    %c5_52 = arith.constant 5 : index
    %c0_53 = arith.constant 0 : index
    %77 = vector.load %arg2[%c5_52, %c0_53] : memref<9x512xf32, #tpu.memory_space<vmem>>, vector<1x512xf32>
    %78 = vector.broadcast %77 : vector<1x512xf32> to vector<8x512xf32>
    %79 = arith.mulf %76, %78 : vector<8x512xf32>
    %c40_54 = arith.constant 40 : index
    %c0_55 = arith.constant 0 : index
    %80 = vector.load %arg8[%c40_54, %c0_55] : memref<72x512xf32, #tpu.memory_space<vmem>>, vector<8x512xf32>
    tpu.vector_store %arg8[%c40_54, %c0_55], %79 {strides = array<i32>} : memref<72x512xf32, #tpu.memory_space<vmem>>, vector<8x512xf32>,
    %c497_i32_56 = arith.constant 497 : i32
    %81 = tpu.dynamic_rotate %53 by %c497_i32_56 dim 1 : vector<8x512xf32>, i32 -> vector<8x512xf32>
    %c6_57 = arith.constant 6 : index
    %c0_58 = arith.constant 0 : index
    %82 = vector.load %arg2[%c6_57, %c0_58] : memref<9x512xf32, #tpu.memory_space<vmem>>, vector<1x512xf32>
    %83 = vector.broadcast %82 : vector<1x512xf32> to vector<8x512xf32>
    %84 = arith.mulf %81, %83 : vector<8x512xf32>
    %c48_59 = arith.constant 48 : index
    %c0_60 = arith.constant 0 : index
    %85 = vector.load %arg8[%c48_59, %c0_60] : memref<72x512xf32, #tpu.memory_space<vmem>>, vector<8x512xf32>
    tpu.vector_store %arg8[%c48_59, %c0_60], %84 {strides = array<i32>} : memref<72x512xf32, #tpu.memory_space<vmem>>, vector<8x512xf32>,
    %c496_i32_61 = arith.constant 496 : i32
    %86 = tpu.dynamic_rotate %53 by %c496_i32_61 dim 1 : vector<8x512xf32>, i32 -> vector<8x512xf32>
    %c7_62 = arith.constant 7 : index
    %c0_63 = arith.constant 0 : index
    %87 = vector.load %arg2[%c7_62, %c0_63] : memref<9x512xf32, #tpu.memory_space<vmem>>, vector<1x512xf32>
    %88 = vector.broadcast %87 : vector<1x512xf32> to vector<8x512xf32>
    %89 = arith.mulf %86, %88 : vector<8x512xf32>
    %c56_64 = arith.constant 56 : index
    %c0_65 = arith.constant 0 : index
    %90 = vector.load %arg8[%c56_64, %c0_65] : memref<72x512xf32, #tpu.memory_space<vmem>>, vector<8x512xf32>
    tpu.vector_store %arg8[%c56_64, %c0_65], %89 {strides = array<i32>} : memref<72x512xf32, #tpu.memory_space<vmem>>, vector<8x512xf32>,
    %c495_i32_66 = arith.constant 495 : i32
    %91 = tpu.dynamic_rotate %53 by %c495_i32_66 dim 1 : vector<8x512xf32>, i32 -> vector<8x512xf32>
    %c8_67 = arith.constant 8 : index
    %c0_68 = arith.constant 0 : index
    %92 = vector.load %arg2[%c8_67, %c0_68] : memref<9x512xf32, #tpu.memory_space<vmem>>, vector<1x512xf32>
    %93 = vector.broadcast %92 : vector<1x512xf32> to vector<8x512xf32>
    %94 = arith.mulf %91, %93 : vector<8x512xf32>
    %c64_69 = arith.constant 64 : index
    %c0_70 = arith.constant 0 : index
    %95 = vector.load %arg8[%c64_69, %c0_70] : memref<72x512xf32, #tpu.memory_space<vmem>>, vector<8x512xf32>
    tpu.vector_store %arg8[%c64_69, %c0_70], %94 {strides = array<i32>} : memref<72x512xf32, #tpu.memory_space<vmem>>, vector<8x512xf32>,
    %c0_71 = arith.constant 0 : index
    %c0_72 = arith.constant 0 : index
    %96 = vector.load %arg5[%c0_71, %c0_72] : memref<8x72xf32, #tpu.memory_space<vmem>>, vector<8x72xf32>
    %c0_73 = arith.constant 0 : index
    %c0_74 = arith.constant 0 : index
    %97 = vector.load %arg8[%c0_73, %c0_74] : memref<72x512xf32, #tpu.memory_space<vmem>>, vector<72x512xf32>
    %cst_75 = arith.constant dense<0.000000e+00> : vector<8x512xf32>
    %98 = tpu.matmul %96, %97, %cst_75 {dimension_numbers = #tpu.dot_dimension_numbers<[1], [0], [0], [1], [0, 0, 1, 1], [], []>} : vector<8x72xf32>, vector<72x512xf32>, vector<8x512xf32> -> vector<8x512xf32>
    %c0_76 = arith.constant 0 : index
    %c0_77 = arith.constant 0 : index
    %99 = vector.load %arg6[%c0_76, %c0_77] : memref<8x1xf32, #tpu.memory_space<vmem>>, vector<8x1xf32>
    %100 = vector.broadcast %99 : vector<8x1xf32> to vector<8x512xf32>
    %101 = arith.addf %98, %100 : vector<8x512xf32>
    %102 = arith.addf %101, %54 : vector<8x512xf32>
    %cst_78 = arith.constant 0.000000e+00 : f32
    %103 = vector.broadcast %cst_78 : f32 to vector<8x512xf32>
    %104 = arith.cmpf ogt, %102, %103 : vector<8x512xf32>
    %cst_79 = arith.constant 0.00999999977 : f32
    %105 = vector.broadcast %cst_79 : f32 to vector<8x512xf32>
    %106 = arith.mulf %105, %102 : vector<8x512xf32>
    %107 = arith.select %104, %102, %106 : vector<8x512xi1>, vector<8x512xf32>
    %c0_80 = arith.constant 0 : index
    %c0_81 = arith.constant 0 : index
    %108 = vector.load %arg7[%c0_80, %c0_81] : memref<8x512xf32, #tpu.memory_space<vmem>>, vector<8x512xf32>
    tpu.vector_store %arg7[%c0_80, %c0_81], %107 {strides = array<i32>} : memref<8x512xf32, #tpu.memory_space<vmem>>, vector<8x512xf32>,
    return
  }
  func.func @transform_0(%arg0: i32) -> (i32, i32) {
    %c0_i32 = arith.constant 0 : i32
    %c0_i32_0 = arith.constant 0 : i32
    return %c0_i32, %arg0 : i32, i32
  }
  func.func @transform_1(%arg0: i32) -> (i32, i32) {
    %c0_i32 = arith.constant 0 : i32
    %c0_i32_0 = arith.constant 0 : i32
    %c0_i32_1 = arith.constant 0 : i32
    return %c0_i32, %c0_i32_0 : i32, i32
  }
  func.func @transform_2(%arg0: i32) -> (i32, i32) {
    %c0_i32 = arith.constant 0 : i32
    %c0_i32_0 = arith.constant 0 : i32
    %c0_i32_1 = arith.constant 0 : i32
    return %c0_i32, %c0_i32_0 : i32, i32
  }
  func.func @transform_3(%arg0: i32) -> (i32, i32) {
    %c0_i32 = arith.constant 0 : i32
    %c0_i32_0 = arith.constant 0 : i32
    %c0_i32_1 = arith.constant 0 : i32
    return %c0_i32, %c0_i32_0 : i32, i32
  }
  func.func @transform_4(%arg0: i32) -> (i32, i32) {
    %c0_i32 = arith.constant 0 : i32
    %c0_i32_0 = arith.constant 0 : i32
    %c0_i32_1 = arith.constant 0 : i32
    return %c0_i32, %c0_i32_0 : i32, i32
  }
  func.func @transform_5(%arg0: i32) -> (i32, i32) {
    %c0_i32 = arith.constant 0 : i32
    %c0_i32_0 = arith.constant 0 : i32
    %c0_i32_1 = arith.constant 0 : i32
    return %c0_i32, %c0_i32_0 : i32, i32
  }
  func.func @transform_6(%arg0: i32) -> (i32, i32) {
    %c0_i32 = arith.constant 0 : i32
    %c0_i32_0 = arith.constant 0 : i32
    return %c0_i32, %arg0 : i32, i32
  }
}

</mosaic_0001>

<bundles_post_ra>
// kernel: tpu_custom_call.1
= control target key start
LH: loop header
LB: loop body
LE: loop exit
PB: predicated region body
PF: predicated region fallthrough
CT: control target
= control target key end

     0   :  { %11 = vsyncpa [#allocation4], 0  ;;  %s2035_s0 = inlined_call_operand.hbm [shape: f32[8,1024], index: 0, kind: input, shape index: {}]   ;;  %s2036_s1 = inlined_call_operand.hbm [shape: f32[9,512], index: 1, kind: input, shape index: {}]   ;;  %s2037_s2 = inlined_call_operand.vmem [shape: f32[16,72], index: 2, kind: input, shape index: {}]   ;;  %s2038_s3 = inlined_call_operand.vmem [shape: f32[16,1], index: 3, kind: input, shape index: {}]   ;;  %s2039_s4 = inlined_call_operand.vmem [shape: f32[8,72], index: 4, kind: input, shape index: {}]   ;;  %s2040_s5 = inlined_call_operand.vmem [shape: f32[8,1], index: 5, kind: input, shape index: {}]   ;;  %s2041_s6 = inlined_call_operand.hbm [shape: f32[8,1024], index: 6, kind: output, shape index: {}]  }
   0x1   :  { %13 = vsyncpa [#allocation4 + $0x1], 0 }
   0x2   :  { %14 = vsyncpa [#allocation7], 0 }
   0x3   :  { %15 = vsyncpa [#allocation5], 0 }
   0x4   :  { %17 = vsyncpa [#allocation5 + $0x1], 0  ;;  %s1481_s21 = smov 0   ;;  %s1483_s22 = smov 0  }
   0x5   :  { %s1485_s23 = smov 0   ;;  %s1487_s24 = smov 0  }
   0x6 LB: > { %s196_s27 = sshll.u32 %s2036_s1, 4  ;;  %s1505_s28 = sadd.s32 4294967295, %s1432_s24   ;;  %s1432_s24 = sphi %s1487_s24, %s2051_s24   ;;  %s1428_s23 = sphi %s1485_s23, %s2050_s23   ;;  %s1424_s22 = sphi %s1483_s22, %s2049_s22   ;;  %s1420_s21 = sphi %s1481_s21, %s2048_s21   ;;  %s197_s27 = int_to_ptr.hbm [resolvable:$true] %s196_s27 }
   0x7   : > { %p1203_p0 = scmp.ge.s32.totalorder %s1432_s24, 1  ;;  %p44_p1 = scmp.eq.s32.totalorder %s1505_s28, 0 }
   0x8   : > { %p185_p2 = scmp.lt.s32.totalorder %s1432_s24, 3  ;;  %s1434_s30 = smov [#allocation6]  }
   0x9   : > { %s198_s7 = sshll.u32 %s1434_s30, 4  ;;  %s1435_s8 = smov 512   ;;  %s199_s7 = int_to_ptr.vmem [resolvable:$true] %s198_s7 }
   0xa   : > { %p1510_p3 = pnand %p1203_p0, %p185_p2  ;;  %s1436_s9 = smov 32  }
   0xb   : > { %s1202_s10 = sadd.s32 4294967294, %s1432_s24   ;;  %s1521_s11 = sadd.s32 1, %s1432_s24  }
   0xc   : > { %p1240_p4 = pneg %p1510_p3  ;;  %s30_s12 = sadd.s32 1, %s1428_s23 }
   0xd   : > { %s27_s13 = ssub.s32 %s1432_s24, %s1521_s11  ;;  %p37_p7 = scmp.ne.s32.totalorder %s1428_s23, %s1424_s22 }
   0xe   : > { %p1241_p6 = pnand %p1240_p4, %p44_p1  ;;  %p28_p8 = scmp.eq.s32.totalorder %s27_s13, 0 }
   0xf   : > { %p38_p9 = scmp.eq.s32.totalorder %s1432_s24, 0  ;;  %p43_p10 = scmp.ne.s32.totalorder %s1424_s22, %s1420_s21 }
  0x10   : > { %1243 = dma.hbm_to_vmem [thread:$0]  (!%p1241_p6), %s197_s27, 1024, %s199_s7, [#allocation7], %s1435_s8, %s1435_s8, %s1436_s9  }
  0x11   : > { %p172_p11 = scmp.eq.s32.totalorder %s1505_s28, 1  ;;  %p1537_p12 = por %p44_p1, %p43_p10 }
  0x12   : > { %s1533_s14 = scalar_select %p28_p8, %s1428_s23, %s30_s12  }
  0x13   : > { %p1541_p13 = por %p172_p11, %p37_p7  ;;  %p178_p0 = scmp.eq.s32.totalorder %s1202_s10, 1 }
  0x14   : > { %p39_p2 = por %p38_p9, %p37_p7  ;;  %s224_s17 = sand.u32 1, %s1428_s23  }
  0x15   : > { %p1546_p4 = por %p178_p0, %p43_p10  ;;  %p1253_p6 = scmp.lt.s32.totalorder %s1432_s24, 2 }
  0x16   : > { %s1206_s19 = sshll.u32 %s224_s17, 5  ;;  %s1230_s20 = sshll.u32 %s1432_s24, 5 }
  0x17   : > { %s233_s27 = scalar_lea.hbm %s2035_s0, %s1230_s20  ;;  %s228_s7 = scalar_lea.vmem [#allocation3], %s1206_s19 }
  0x18   : > { %s235_s30 = sshll.u32 %s233_s27, 4  ;;  %s237_s8 = sshll.u32 %s228_s7, 4  ;;  %s236_s30 = int_to_ptr.hbm [resolvable:$true] %s235_s30  ;;  %s238_s8 = int_to_ptr.vmem [resolvable:$true] %s237_s8 }
  0x19   : > { %p1555_p8 = pnand %p1253_p6, %p39_p2  ;;  %s225_s10 = scalar_lea.sflag [#allocation4], %s224_s17 }
  0x1a   : > { %s1332_s12 = sshra.s32 %s236_s30, 4  ;;  %s1339_s19 = scalar_lea.hbm %s2035_s0, 64  ;;  %s1333_s12 = int_to_ptr.hbm [resolvable:$true] %s1332_s12 }
  0x1b   : > { %s1334_s13 = scalar_lea.hbm %s1333_s12, 32  ;;  %p1336_p9 = pneg %p1555_p8 }
  0x1c   : > { %p1335_p7 = scmp.ne.s32.totalorder %s1333_s12, %s1334_s13  ;;  %p1340_p0 = scmp.lt.s32.totalorder %s1333_s12, %s2035_s0 }
  0x1d   : > { %p1341_p2 = scmp.lt.s32.totalorder %s1339_s19, %s1334_s13 }
  0x1e   : > { %p1337_p10 = pnand %p1336_p9, %p1335_p7 }
  0x1f   : > { %p1342_p6 = por %p1341_p2, %p1340_p0 }
  0x20   : > { %p1338_p11 = pneg %p1337_p10 }
  0x22   : > { %p1343_p5 = pnand %p1342_p6, %p1338_p11 }
  0x24   : > { %1346 = shalt.err (!%p1343_p5)
}
  0x25   : > { %1247 = dma.hbm_to_vmem [thread:$0]  (!%p1555_p8), %s236_s30, 512, %s238_s8, %s225_s10  }
  0x26   : > { %246 = sbr.rel (%p1510_p3) target bundleno = 718 (0x2ce), region = 44  ;;  %s1572_s17 = sand.u32 (!%p1510_p3), 1, %s1424_s22  }
  0x27   : > { %s1210_s7 = sshll.u32 (!%p1510_p3), %s1572_s17, 5  ;;  %s249_s20 = scalar_lea.sflag (!%p1510_p3), [#allocation4], %s1572_s17 }
  0x28   : > { %s252_s12 = scalar_lea.vmem (!%p1510_p3), [#allocation3], %s1210_s7 }
  0x2b   : > { %1407 = dma.done.wait (%p1537_p12), %s249_s20, 512  }
  0x2c   : > { %1409 = vsyncadd (%p1537_p12), %s249_s20, 4294966784 }
  0x2d   : > { %1411 = dma.done.wait (%p44_p1), [#allocation7], 1024  }
  0x2e   : > { %1413 = vsyncadd (%p44_p1), [#allocation7], 4294966272  ;;  %v1586_v0 = vld [vmem:[%s252_s12 + $0x18] sm:$0xff]  ;;  %v1588_v1 = vld [vmem:[%s252_s12 + $0x10] sm:$0xff]  ;;  %s1437_s29 = smov 111   ;;  %s1438_s30 = smov 112   ;;  %v301_v6 = vlaneseq }
  0x2f   : > { %v1590_v2 = vld [vmem:[%s252_s12] sm:$0xff]  ;;  %528 = vrot.lane.b32.xlu1 %v1586_v0, %s1437_s29  ;;  %494 = vrot.lane.b32.xlu2 %v1588_v1, %s1438_s30  ;;  %s1439_s15 = smov 113   ;;  %s1440_s8 = smov 127   ;;  %v1616_v3 = vld [vmem:[%s252_s12 + $0x8] sm:$0xff]  ;;  %vm604_vm8 = vcmask 588800  }
  0x30   : > { %522 = vrot.lane.b32.xlu0 %v1590_v2, %s1437_s29  ;;  %s1441_s9 = smov 1   ;;  %s1442_s10 = smov 15   ;;  %v1660_v7 = vand.u32 127, %v301_v6  ;;  %v1662_v8 = vld [vmem:[#allocation6 + $0x20] ss:$8 sm:$0xf] }
  0x31   : > { %s1443_s13 = smov 16   ;;  %s1444_s25 = smov 17   ;;  %v541_v9 = vperm.slane %v1662_v8, 3  ;;  %v1668_v15 = vld [vmem:[#allocation6 + $0x7] ss:$8 sm:$0xf] }
  0x32   : > { %vm530_vm0 = vcmp.lt.s32.totalorder %v1660_v7, 111  ;;  %v509_v16 = vperm.slane %v1668_v15, 3  ;;  %vm498_vm1 = vcmp.lt.s32.totalorder %v1660_v7, 112  ;;  %v540_v17 = vperm.slane %v1662_v8, 2 }
  0x33   : > { %v508_v21 = vperm.slane %v1668_v15, 2  ;;  %v472_v27 = vld [vmem:[#allocation6 + $0x6] ss:$8 sm:$0xf]  ;;  %vm466_vm2 = vcmp.lt.s32.totalorder %v1660_v7, 113  ;;  %vm434_vm3 = vcmp.lt.s32.totalorder %v1660_v7, 127 }
  0x34   : > { %v476_v29 = vperm.slane %v472_v27, 2  ;;  %v477_v30 = vperm.slane %v472_v27, 3  ;;  %v1688_v38 = vld [vmem:[#allocation6 + $0x5] ss:$8 sm:$0xf]  ;;  %v538_v48 = vperm.slane %v1662_v8, 0 }
  0x35   : > { %v444_v39 = vperm.slane %v1688_v38, 2  ;;  %v445_v40 = vperm.slane %v1688_v38, 3  ;;  %v539_v49 = vperm.slane %v1662_v8, 1  ;;  %v506_v52 = vperm.slane %v1668_v15, 0 }
  0x36   : > { %v507_v53 = vperm.slane %v1668_v15, 1  ;;  %v474_v60 = vperm.slane %v472_v27, 0  ;;  %v475_v61 = vperm.slane %v472_v27, 1  ;;  %vm398_vm4 = vcmp.lt.s32.totalorder %v1660_v7, 1 }
  0x37   : > { %496 = vrot.lane.b32.xlu2 %v1586_v0, %s1438_s30  ;;  %490 = vrot.lane.b32.xlu1 %v1590_v2, %s1438_s30  ;;  %vm366_vm5 = vcmp.lt.s32.totalorder %v1660_v7, 15  ;;  %v1747_v27 = vld [vmem:[#allocation6 + $0x1] ss:$8 sm:$0xf]  ;;  %vm334_vm6 = vcmp.lt.s32.totalorder %v1660_v7, 16  ;;  %vm303_vm7 = vcmp.lt.s32.totalorder %v1660_v7, 17 }
  0x38   : > { %526 = vrot.lane.b32.xlu0 %v1588_v1, %s1437_s29 }
  0x3f   : > { %464 = vrot.lane.b32.xlu2 %v1586_v0, %s1439_s15  ;;  %462 = vrot.lane.b32.xlu1 %v1588_v1, %s1439_s15 }
  0x40   : > { %458 = vrot.lane.b32.xlu0 %v1590_v2, %s1439_s15 }
  0x47   : > { %432 = vrot.lane.b32.xlu2 %v1586_v0, %s1440_s8  ;;  %430 = vrot.lane.b32.xlu1 %v1588_v1, %s1440_s8 }
  0x48   : > { %426 = vrot.lane.b32.xlu0 %v1590_v2, %s1440_s8 }
  0x4f   : > { %392 = vrot.lane.b32.xlu2 %v1616_v3, %s1441_s9  ;;  %492 = vrot.lane.b32.xlu1 %v1616_v3, %s1438_s30 }
  0x50   : > { %524 = vrot.lane.b32.xlu0 %v1616_v3, %s1437_s29 }
  0x57   : > { %460 = vrot.lane.b32.xlu2 %v1616_v3, %s1439_s15  ;;  %396 = vrot.lane.b32.xlu1 %v1586_v0, %s1441_s9 }
  0x58   : > { %394 = vrot.lane.b32.xlu0 %v1588_v1, %s1441_s9 }
  0x5f   : > { %364 = vrot.lane.b32.xlu2 %v1586_v0, %s1442_s10  ;;  %362 = vrot.lane.b32.xlu1 %v1588_v1, %s1442_s10 }
  0x60   : > { %360 = vrot.lane.b32.xlu0 %v1616_v3, %s1442_s10 }
  0x67   : > { %330 = vrot.lane.b32.xlu2 %v1588_v1, %s1443_s13  ;;  %328 = vrot.lane.b32.xlu1 %v1616_v3, %s1443_s13 }
  0x68   : > { %428 = vrot.lane.b32.xlu0 %v1616_v3, %s1440_s8 }
  0x6f   : > { %297 = vrot.lane.b32.xlu2 %v1588_v1, %s1444_s25  ;;  %295 = vrot.lane.b32.xlu1 %v1616_v3, %s1444_s25 }
  0x70   : > { %332 = vrot.lane.b32.xlu0 %v1586_v0, %s1443_s13 }
  0x77   : > { %358 = vrot.lane.b32.xlu2 %v1590_v2, %s1442_s10  ;;  %390 = vrot.lane.b32.xlu1 %v1590_v2, %s1441_s9 }
  0x78   : > { %299 = vrot.lane.b32.xlu0 %v1586_v0, %s1444_s25 }
  0x7f   : > { %293 = vrot.lane.b32.xlu1 %v1590_v2, %s1444_s25 }
  0x80   : > { %326 = vrot.lane.b32.xlu0 %v1590_v2, %s1443_s13 }
  0x89   : > { %v1658_v4 = vpop.permute.xlu2 %494 }
  0x91   : > { %v497_v5 = vpop.permute.xlu2 %496 }
  0x92   : > { %v499_v22 = vsel %vm498_vm1, %v1658_v4, %v497_v5 }
  0x93   : > { %v516_v28 = vmul.f32 %v508_v21, %v499_v22 }
  0x99   : > { %v465_v10 = vpop.permute.xlu2 %464 }
  0xa1   : > { %v529_v11 = vpop.permute.xlu1 %528  ;;  %v433_v23 = vpop.permute.xlu2 %432 }
  0xa2   : > { %v523_v12 = vpop.permute.xlu0 %522 }
  0xa3   : > { %v534_v13 = vsel %vm530_vm0, %v529_v11, %v523_v12 }
  0xa4   : > { %v549_v14 = vmul.f32 %v541_v9, %v534_v13 }
  0xa6   : > { %687 = vmatpush.msra.mxu3 %v549_v14 }
  0xa9   : > { %v491_v18 = vpop.permute.xlu1 %490  ;;  %v1686_v37 = vpop.permute.xlu2 %392 }
  0xaa   : > { %v502_v19 = vsel %vm498_vm1, %v497_v5, %v491_v18  ;;  %v527_v20 = vpop.permute.xlu0 %526 }
  0xab   : > { %v531_v24 = vsel %vm530_vm0, %v527_v20, %v529_v11  ;;  %v517_v25 = vmul.f32 %v509_v16, %v502_v19 }
  0xac   : > { %v548_v26 = vmul.f32 %v540_v17, %v531_v24  ;;  %v1737_v17 = vld [vmem:[#allocation6 + $0x2] ss:$8 sm:$0xf] }
  0xad   : > { %688 = vmatpush.msra.mxu3 %v517_v25  ;;  %v376_v19 = vperm.slane %v1737_v17, 2 }
  0xae   : > { %664 = vmatpush.msra.mxu2 %v548_v26 }
  0xb0   : > { %665 = vmatpush.msra.mxu2 %v516_v28  ;;  %v344_v28 = vperm.slane %v1747_v27, 2 }
  0xb1   : > { %v463_v31 = vpop.permute.xlu1 %462  ;;  %v461_v47 = vpop.permute.xlu2 %460 }
  0xb2   : > { %v467_v32 = vsel %vm466_vm2, %v463_v31, %v465_v10  ;;  %v459_v33 = vpop.permute.xlu0 %458  ;;  %v468_v62 = vsel %vm466_vm2, %v461_v47, %v463_v31 }
  0xb3   : > { %v470_v34 = vsel %vm466_vm2, %v465_v10, %v459_v33  ;;  %v484_v35 = vmul.f32 %v476_v29, %v467_v32  ;;  %v469_v63 = vsel %vm466_vm2, %v459_v33, %v461_v47  ;;  %v483_v6 = vmul.f32 %v475_v61, %v468_v62  ;;  %v592_v32 = vld [vmem:[%s2038_s3] sm:$0xff] }
  0xb4   : > { %v485_v36 = vmul.f32 %v477_v30, %v470_v34  ;;  %v482_v5 = vmul.f32 %v474_v60, %v469_v63  ;;  %v442_v29 = vperm.slane %v1688_v38, 0  ;;  %v443_v30 = vperm.slane %v1688_v38, 1 }
  0xb5   : > { %666 = vmatpush.msra.mxu2 %v484_v35  ;;  %v1445_v35 = vmov 0   ;;  %v345_v47 = vperm.slane %v1747_v27, 3 }
  0xb6   : > { %689 = vmatpush.msra.mxu3 %v485_v36  ;;  %1300 = vset.pattern.permute.xlu2 %v1445_v35 }
  0xb7   : > { %1301 = vset.pattern.permute.xlu0 %v1445_v35  ;;  %596 = vperm.xlu2 %1300, %v592_v32  }
  0xb9   : > { %v1693_v41 = vpop.permute.xlu1 %430  ;;  %v1727_v10 = vpop.permute.xlu2 %364 }
  0xba   : > { %v435_v42 = vsel %vm434_vm3, %v1693_v41, %v433_v23  ;;  %v1698_v43 = vpop.permute.xlu0 %426 }
  0xbb   : > { %v438_v44 = vsel %vm434_vm3, %v433_v23, %v1698_v43  ;;  %v452_v45 = vmul.f32 %v444_v39, %v435_v42 }
  0xbc   : > { %v453_v46 = vmul.f32 %v445_v40, %v438_v44  ;;  %v308_v44 = vld [vmem:[#allocation6] ss:$8 sm:$0xf] }
  0xbd   : > { %667 = vmatpush.msra.mxu2 %v452_v45 }
  0xbe   : > { %690 = vmatpush.msra.mxu3 %v453_v46  ;;  %v312_v46 = vperm.slane %v308_v44, 2 }
  0xbf   : > { %668 = vmatpush.msra.mxu2 %v1588_v1 }
  0xc0   : > { %691 = vmatpush.msra.mxu3 %v1586_v0  ;;  %v1722_v0 = vld [vmem:[#allocation6 + $0x3] ss:$8 sm:$0xf] }
  0xc1   : > { %v493_v50 = vpop.permute.xlu1 %492  ;;  %v408_v8 = vperm.slane %v1722_v0, 2  ;;  %v409_v9 = vperm.slane %v1722_v0, 3  ;;  %v331_v23 = vpop.permute.xlu2 %330 }
  0xc2   : > { %v525_v51 = vpop.permute.xlu0 %524  ;;  %v500_v54 = vsel %vm498_vm1, %v493_v50, %v1658_v4  ;;  %v501_v55 = vsel %vm498_vm1, %v491_v18, %v493_v50  ;;  %v377_v18 = vperm.slane %v1737_v17, 3 }
  0xc3   : > { %v533_v56 = vsel %vm530_vm0, %v523_v12, %v525_v51  ;;  %v532_v57 = vsel %vm530_vm0, %v525_v51, %v527_v20  ;;  %v514_v1 = vmul.f32 %v506_v52, %v501_v55  ;;  %v515_v4 = vmul.f32 %v507_v53, %v500_v54  ;;  %v554_v51 = vld [vmem:[%s2037_s2] sm:$0xff] }
  0xc4   : > { %v546_v58 = vmul.f32 %v538_v48, %v533_v56  ;;  %v547_v59 = vmul.f32 %v539_v49, %v532_v57  ;;  %v407_v53 = vperm.slane %v1722_v0, 1  ;;  %v313_v54 = vperm.slane %v308_v44, 3 }
  0xc5   : > { %v374_v56 = vperm.slane %v1737_v17, 0  ;;  %v375_v57 = vperm.slane %v1737_v17, 1 }
  0xc6   : > { %618 = vmatpush.msra.mxu0 %v546_v58  ;;  %641 = vmatpush.msra.mxu1 %v547_v59 }
  0xc8   : > { %619 = vmatpush.msra.mxu0 %v514_v1  ;;  %642 = vmatpush.msra.mxu1 %v515_v4 }
  0xc9   : > { %v1729_v11 = vpop.permute.xlu1 %396  ;;  %v298_v45 = vpop.permute.xlu2 %297 }
  0xca   : > { %620 = vmatpush.msra.mxu0 %v482_v5  ;;  %643 = vmatpush.msra.mxu1 %v483_v6  ;;  %v395_v12 = vpop.permute.xlu0 %394 }
  0xcb   : > { %v399_v13 = vsel %vm398_vm4, %v395_v12, %v1729_v11  ;;  %v400_v14 = vsel %vm398_vm4, %v1686_v37, %v395_v12  ;;  %v311_v12 = vperm.slane %v308_v44, 1 }
  0xcc   : > { %v416_v15 = vmul.f32 %v408_v8, %v400_v14  ;;  %v417_v16 = vmul.f32 %v409_v9, %v399_v13  ;;  %v343_v8 = vperm.slane %v1747_v27, 1 }
  0xce   : > { %669 = vmatpush.msra.mxu2 %v416_v15  ;;  %692 = vmatpush.msra.mxu3 %v417_v16 }
  0xd1   : > { %v363_v20 = vpop.permute.xlu1 %362 }
  0xd2   : > { %v367_v21 = vsel %vm366_vm5, %v363_v20, %v1727_v10  ;;  %v361_v22 = vpop.permute.xlu0 %360 }
  0xd3   : > { %v368_v24 = vsel %vm366_vm5, %v361_v22, %v363_v20  ;;  %v385_v25 = vmul.f32 %v377_v18, %v367_v21 }
  0xd4   : > { %v384_v26 = vmul.f32 %v376_v19, %v368_v24 }
  0xd5   : > { %693 = vmatpush.msra.mxu3 %v385_v25 }
  0xd6   : > { %670 = vmatpush.msra.mxu2 %v384_v26 }
  0xd9   : > { %v1753_v31 = vpop.permute.xlu1 %328 }
  0xda   : > { %v336_v33 = vsel %vm334_vm6, %v1753_v31, %v331_v23  ;;  %v429_v34 = vpop.permute.xlu0 %428 }
  0xdb   : > { %v436_v36 = vsel %vm434_vm3, %v429_v34, %v1693_v41  ;;  %v437_v38 = vsel %vm434_vm3, %v1698_v43, %v429_v34  ;;  %v352_v39 = vmul.f32 %v344_v28, %v336_v33 }
  0xdc   : > { %v450_v40 = vmul.f32 %v442_v29, %v437_v38  ;;  %v451_v42 = vmul.f32 %v443_v30, %v436_v36  ;;  %v555_v30 = vld [vmem:[%s2037_s2 + $0x8] sm:$0xff] }
  0xdd   : > { %671 = vmatpush.msra.mxu2 %v352_v39 }
  0xde   : > { %621 = vmatpush.msra.mxu0 %v450_v40  ;;  %644 = vmatpush.msra.mxu1 %v451_v42  ;;  %v593_v40 = vld [vmem:[%s2038_s3 + $0x8] sm:$0xff] }
  0xe0   : > { %622 = vmatpush.msra.mxu0 %v1590_v2  ;;  %645 = vmatpush.msra.mxu1 %v1616_v3  ;;  %v359_v2 = vpop.permute.xlu2 %358  ;;  %v406_v3 = vperm.slane %v1722_v0, 0 }
  0xe1   : > { %v296_v41 = vpop.permute.xlu1 %295  ;;  %v370_v58 = vsel %vm366_vm5, %v1727_v10, %v359_v2  ;;  %v369_v59 = vsel %vm366_vm5, %v359_v2, %v361_v22 }
  0xe2   : > { %v305_v43 = vsel %vm303_vm7, %v296_v41, %v298_v45  ;;  %v333_v48 = vpop.permute.xlu0 %332  ;;  %v382_v5 = vmul.f32 %v374_v56, %v370_v58  ;;  %v383_v6 = vmul.f32 %v375_v57, %v369_v59 }
  0xe3   : > { %v335_v49 = vsel %vm334_vm6, %v331_v23, %v333_v48  ;;  %v320_v50 = vmul.f32 %v312_v46, %v305_v43  ;;  %v941_v46 = vld [vmem:[#allocation6 + $0x20] ss:$8 sm:$0xf] }
  0xe4   : > { %v353_v52 = vmul.f32 %v345_v47, %v335_v49  ;;  %v946_v47 = vperm.slane %v941_v46, 3 }
  0xe5   : > { %672 = vmatpush.msra.mxu2 %v320_v50  ;;  %v911_v50 = vld [vmem:[#allocation6 + $0x7] ss:$8 sm:$0xf] }
  0xe6   : > { %694 = vmatpush.msra.mxu3 %v353_v52  ;;  %1217 = vmatmul.msk.f32.vlgmr.msra.gmra.mxu2 %vm604_vm8, %v554_v51  ;;  %v916_v52 = vperm.slane %v911_v50, 3 }
  0xe9   : > { %v391_v55 = vpop.permute.xlu1 %390 }
  0xea   : > { %v401_v60 = vsel %vm398_vm4, %v391_v55, %v1686_v37  ;;  %v402_v61 = vsel %vm398_vm4, %v1729_v11, %v391_v55  ;;  %v300_v62 = vpop.permute.xlu0 %299  ;;  %v342_v37 = vperm.slane %v1747_v27, 0  ;;  %v310_v11 = vperm.slane %v308_v44, 0  ;;  %v881_v55 = vld [vmem:[#allocation6 + $0x6] ss:$8 sm:$0xf] }
  0xeb   : > { %v304_v63 = vsel %vm303_vm7, %v298_v45, %v300_v62  ;;  %v414_v0 = vmul.f32 %v406_v3, %v402_v61  ;;  %v415_v1 = vmul.f32 %v407_v53, %v401_v60  ;;  %v886_v57 = vperm.slane %v881_v55, 3 }
  0xec   : > { %v321_v4 = vmul.f32 %v313_v54, %v304_v63 }
  0xed   : > { %623 = vmatpush.msra.mxu0 %v414_v0  ;;  %646 = vmatpush.msra.mxu1 %v415_v1  ;;  %v945_v0 = vperm.slane %v941_v46, 2 }
  0xee   : > { %695 = vmatpush.msra.mxu3 %v321_v4  ;;  %1218 = vmatmul.msk.f32.gmra.mxu2 %vm604_vm8, %v555_v30 }
  0xef   : > { %624 = vmatpush.msra.mxu0 %v382_v5  ;;  %647 = vmatpush.msra.mxu1 %v383_v6 }
  0xf0   : > { %1219 = vmatmul.msk.f32.vlgmr.msra.gmra.mxu3 %vm604_vm8, %v554_v51 }
  0xf1   : > { %v294_v9 = vpop.permute.xlu1 %293 }
  0xf2   : > { %v327_v10 = vpop.permute.xlu0 %326  ;;  %v306_v13 = vsel %vm303_vm7, %v294_v9, %v296_v41  ;;  %v307_v14 = vsel %vm303_vm7, %v300_v62, %v294_v9  ;;  %v1906_v62 = vld [vmem:[#allocation6 + $0x5] ss:$8 sm:$0xf] }
  0xf3   : > { %v337_v15 = vsel %vm334_vm6, %v327_v10, %v1753_v31  ;;  %v338_v16 = vsel %vm334_vm6, %v333_v48, %v327_v10  ;;  %v318_v19 = vmul.f32 %v310_v11, %v307_v14  ;;  %v319_v20 = vmul.f32 %v311_v12, %v306_v13 }
  0xf4   : > { %v350_v17 = vmul.f32 %v342_v37, %v338_v16  ;;  %v351_v18 = vmul.f32 %v343_v8, %v337_v15  ;;  %v856_v63 = vperm.slane %v1906_v62, 3  ;;  %v943_v10 = vperm.slane %v941_v46, 0 }
  0xf5   : > { %v944_v11 = vperm.slane %v941_v46, 1  ;;  %v915_v12 = vperm.slane %v911_v50, 2  ;;  %v913_v14 = vperm.slane %v911_v50, 0  ;;  %v914_v15 = vperm.slane %v911_v50, 1 }
  0xf6   : > { %625 = vmatpush.msra.mxu0 %v350_v17  ;;  %648 = vmatpush.msra.mxu1 %v351_v18 }
  0xf8   : > { %626 = vmatpush.msra.mxu0 %v318_v19  ;;  %649 = vmatpush.msra.mxu1 %v319_v20  ;;  %v883_v20 = vperm.slane %v881_v55, 0 }
  0xf9   : > { %1213 = vmatmul.msk.f32.vlgmr.msra.gmra.mxu0 %vm604_vm8, %v554_v51  ;;  %1215 = vmatmul.msk.f32.vlgmr.msra.gmra.mxu1 %vm604_vm8, %v554_v51 }
  0xfa   : > { %1220 = vmatmul.msk.f32.gmra.mxu3 %vm604_vm8, %v555_v30 }
 0x101   : > { %1214 = vmatmul.msk.f32.gmra.mxu0 %vm604_vm8, %v555_v30  ;;  %1216 = vmatmul.msk.f32.gmra.mxu1 %vm604_vm8, %v555_v30 }
 0x111   : > { %v597_v21 = vpop.permute.xlu2 %596 }
 0x169   : > { %v674_v34 = vpop.f32.mrf.mxu2 }
 0x16a   : > { %v675_v36 = vadd.f32 %v674_v34, %v597_v21 }
 0x16c   : > { %v709_v38 = vmul.f32 0.01, %v675_v36  ;;  %vm705_vm12 = vcmp.gt.f32.partialorder %v675_v36, 0.0 }
 0x16e   : > { %v1841_v39 = vsel %vm705_vm12, %v675_v36, %v709_v38 }
 0x173   : > { %v697_v31 = vpop.f32.mrf.mxu3 }
 0x174   : > { %v698_v32 = vadd.f32 %v697_v31, %v597_v21 }
 0x176   : > { %v628_v22 = vpop.f32.mrf.mxu0  ;;  %v651_v23 = vpop.f32.mrf.mxu1  ;;  %v710_v33 = vmul.f32 0.01, %v698_v32  ;;  %vm706_vm11 = vcmp.gt.f32.partialorder %v698_v32, 0.0 }
 0x177   : > { %v629_v24 = vadd.f32 %v628_v22, %v597_v21  ;;  %v652_v25 = vadd.f32 %v651_v23, %v597_v21 }
 0x178   : > { %v1833_v35 = vsel %vm706_vm11, %v698_v32, %v710_v33  ;;  %v884_v32 = vperm.slane %v881_v55, 1  ;;  %v885_v33 = vperm.slane %v881_v55, 2  ;;  %v817_v55 = vld [vmem:[#allocation6 + $0x3] ss:$8 sm:$0xf] }
 0x179   : > { %vm703_vm9 = vcmp.gt.f32.partialorder %v629_v24, 0.0  ;;  %v707_v26 = vmul.f32 0.01, %v629_v24  ;;  %vm704_vm10 = vcmp.gt.f32.partialorder %v652_v25, 0.0  ;;  %v708_v27 = vmul.f32 0.01, %v652_v25 }
 0x17b   : > { %v1810_v28 = vsel %vm703_vm9, %v629_v24, %v707_v26  ;;  %v1812_v29 = vsel %vm704_vm10, %v652_v25, %v708_v27 }
 0x17c   : > { %929 = vrot.lane.b32.xlu0 %v1810_v28, %s1437_s29  ;;  %807 = vrot.lane.b32.xlu2 %v1812_v29, %s1441_s9 }
 0x17d   : > { %901 = vrot.lane.b32.xlu1 %v1812_v29, %s1438_s30 }
 0x17e   : > { %v654_v7 = vpop.f32.mrf.mxu1 }
 0x184   : > { %899 = vrot.lane.b32.xlu0 %v1810_v28, %s1438_s30  ;;  %871 = vrot.lane.b32.xlu2 %v1812_v29, %s1439_s15 }
 0x185   : > { %747 = vrot.lane.b32.xlu1 %v1812_v29, %s1443_s13 }
 0x18c   : > { %869 = vrot.lane.b32.xlu0 %v1810_v28, %s1439_s15  ;;  %935 = vrot.lane.b32.xlu2 %v1833_v35, %s1437_s29 }
 0x18d   : > { %717 = vrot.lane.b32.xlu1 %v1812_v29, %s1444_s25 }
 0x194   : > { %839 = vrot.lane.b32.xlu0 %v1810_v28, %s1440_s8  ;;  %905 = vrot.lane.b32.xlu2 %v1833_v35, %s1438_s30 }
 0x195   : > { %933 = vrot.lane.b32.xlu1 %v1841_v39, %s1437_s29 }
 0x19c   : > { %875 = vrot.lane.b32.xlu2 %v1833_v35, %s1439_s15  ;;  %931 = vrot.lane.b32.xlu0 %v1812_v29, %s1437_s29 }
 0x19d   : > { %903 = vrot.lane.b32.xlu1 %v1841_v39, %s1438_s30 }
 0x1a4   : > { %845 = vrot.lane.b32.xlu2 %v1833_v35, %s1440_s8  ;;  %777 = vrot.lane.b32.xlu0 %v1812_v29, %s1442_s10 }
 0x1a5   : > { %873 = vrot.lane.b32.xlu1 %v1841_v39, %s1439_s15 }
 0x1ac   : > { %781 = vrot.lane.b32.xlu2 %v1833_v35, %s1442_s10  ;;  %841 = vrot.lane.b32.xlu0 %v1812_v29, %s1440_s8 }
 0x1ad   : > { %843 = vrot.lane.b32.xlu1 %v1841_v39, %s1440_s8  ;;  %s1382_s8 = scalar_lea.hbm %s2041_s6, 64 }
 0x1b4   : > { %749 = vrot.lane.b32.xlu2 %v1841_v39, %s1443_s13  ;;  %809 = vrot.lane.b32.xlu0 %v1841_v39, %s1441_s9 }
 0x1b5   : > { %811 = vrot.lane.b32.xlu1 %v1833_v35, %s1441_s9 }
 0x1bc   : > { %719 = vrot.lane.b32.xlu2 %v1841_v39, %s1444_s25  ;;  %751 = vrot.lane.b32.xlu0 %v1833_v35, %s1443_s13 }
 0x1bd   : > { %779 = vrot.lane.b32.xlu1 %v1841_v39, %s1442_s10 }
 0x1c4   : > { %775 = vrot.lane.b32.xlu2 %v1810_v28, %s1442_s10  ;;  %721 = vrot.lane.b32.xlu0 %v1833_v35, %s1444_s25 }
 0x1c5   : > { %805 = vrot.lane.b32.xlu1 %v1810_v28, %s1441_s9 }
 0x1cc   : > { %601 = vperm.xlu2 %1300, %v593_v40   ;;  %745 = vrot.lane.b32.xlu0 %v1810_v28, %s1443_s13  ;;  %s1231_s13 = sshll.u32 %s1505_s28, 5 }
 0x1cd   : > { %715 = vrot.lane.b32.xlu1 %v1810_v28, %s1444_s25  ;;  %s286_s25 = scalar_lea.vmem [#allocation8], %s1210_s7  ;;  %s1117_s20 = scalar_lea.hbm %s2041_s6, %s1231_s13 }
 0x1ce   : > { %s1119_s28 = sshll.u32 %s286_s25, 4  ;;  %s1121_s12 = sshll.u32 %s1117_s20, 4  ;;  %s1120_s28 = int_to_ptr.vmem [resolvable:$true] %s1119_s28  ;;  %s1122_s12 = int_to_ptr.hbm [resolvable:$true] %s1121_s12 }
 0x1cf   : > { %s1106_s7 = scalar_lea.sflag [#allocation5], %s1572_s17  ;;  %s1376_s19 = sshra.s32 %s1122_s12, 4  ;;  %s1377_s19 = int_to_ptr.hbm [resolvable:$true] %s1376_s19 }
 0x1d0   : > { %s1378_s29 = scalar_lea.hbm %s1377_s19, 32  ;;  %p1383_p12 = scmp.lt.s32.totalorder %s1377_s19, %s2041_s6 }
 0x1d1   : > { %p1379_p1 = scmp.ne.s32.totalorder %s1377_s19, %s1378_s29  ;;  %p1384_p8 = scmp.lt.s32.totalorder %s1382_s8, %s1378_s29 }
 0x1d3   : > { %p1380_p3 = pnand %p1379_p1, %p1541_p13  ;;  %p1385_p7 = por %p1384_p8, %p1383_p12 }
 0x1d5   : > { %p1381_p5 = pneg %p1380_p3 }
 0x1d6   : > { %v1892_v42 = vpop.permute.xlu2 %807 }
 0x1d7   : > { %p1386_p9 = pnand %p1385_p7, %p1381_p5 }
 0x1de   : > { %v1894_v44 = vpop.permute.xlu2 %871 }
 0x1e6   : > { %v936_v45 = vpop.permute.xlu2 %935 }
 0x1ee   : > { %v930_v41 = vpop.permute.xlu0 %929  ;;  %v906_v51 = vpop.permute.xlu2 %905 }
 0x1ef   : > { %v940_v43 = vsel %vm530_vm0, %v936_v45, %v930_v41  ;;  %v902_v48 = vpop.permute.xlu1 %901 }
 0x1f0   : > { %v954_v49 = vmul.f32 %v946_v47, %v940_v43  ;;  %v853_v47 = vperm.slane %v1906_v62, 0  ;;  %v855_v43 = vperm.slane %v1906_v62, 2 }
 0x1f2   : > { %1072 = vmatpush.msrb.mxu3 %v954_v49 }
 0x1f6   : > { %v900_v2 = vpop.permute.xlu0 %899  ;;  %v876_v56 = vpop.permute.xlu2 %875 }
 0x1f7   : > { %v910_v3 = vsel %vm498_vm1, %v906_v51, %v900_v2  ;;  %v1900_v53 = vpop.permute.xlu1 %747  ;;  %v909_v16 = vsel %vm498_vm1, %v900_v2, %v902_v48 }
 0x1f8   : > { %v924_v54 = vmul.f32 %v916_v52, %v910_v3  ;;  %v921_v27 = vmul.f32 %v913_v14, %v909_v16 }
 0x1fa   : > { %1073 = vmatpush.msrb.mxu3 %v924_v54 }
 0x1fe   : > { %v870_v58 = vpop.permute.xlu0 %869  ;;  %v846_v1 = vpop.permute.xlu2 %845 }
 0x1ff   : > { %v880_v59 = vsel %vm466_vm2, %v876_v56, %v870_v58  ;;  %v1904_v60 = vpop.permute.xlu1 %717  ;;  %v879_v25 = vsel %vm466_vm2, %v870_v58, %v1894_v44  ;;  %v996_v58 = vld [vmem:[%s2040_s5] sm:$0xff] }
 0x200   : > { %v894_v61 = vmul.f32 %v886_v57, %v880_v59  ;;  %v891_v31 = vmul.f32 %v883_v20, %v879_v25  ;;  %v822_v57 = vperm.slane %v817_v55, 3  ;;  %999 = vperm.xlu0 %1301, %v996_v58   ;;  %v819_v25 = vperm.slane %v817_v55, 0  ;;  %v700_v58 = vpop.f32.mrf.mxu3 }
 0x202   : > { %1074 = vmatpush.msrb.mxu3 %v894_v61 }
 0x206   : > { %v840_v4 = vpop.permute.xlu0 %839  ;;  %v1927_v34 = vpop.permute.xlu2 %781 }
 0x207   : > { %v850_v5 = vsel %vm434_vm3, %v846_v1, %v840_v4  ;;  %v934_v6 = vpop.permute.xlu1 %933 }
 0x208   : > { %v937_v37 = vsel %vm530_vm0, %v934_v6, %v936_v45  ;;  %v864_v8 = vmul.f32 %v856_v63, %v850_v5 }
 0x209   : > { %v953_v9 = vmul.f32 %v945_v0, %v937_v37  ;;  %v727_v37 = vld [vmem:[#allocation6] ss:$8 sm:$0xf] }
 0x20a   : > { %1075 = vmatpush.msrb.mxu3 %v864_v8 }
 0x20b   : > { %1052 = vmatpush.msrb.mxu2 %v953_v9 }
 0x20c   : > { %1076 = vmatpush.msrb.mxu3 %v1833_v35 }
 0x20e   : > { %v932_v13 = vpop.permute.xlu0 %931 }
 0x20f   : > { %v904_v17 = vpop.permute.xlu1 %903  ;;  %v938_v18 = vsel %vm530_vm0, %v932_v13, %v934_v6  ;;  %v939_v19 = vsel %vm530_vm0, %v930_v41, %v932_v13  ;;  %v854_v41 = vperm.slane %v1906_v62, 1 }
 0x210   : > { %v907_v21 = vsel %vm498_vm1, %v904_v17, %v906_v51  ;;  %v908_v22 = vsel %vm498_vm1, %v902_v48, %v904_v17  ;;  %v951_v23 = vmul.f32 %v943_v10, %v939_v19  ;;  %v952_v24 = vmul.f32 %v944_v11, %v938_v18  ;;  %v750_v51 = vpop.permute.xlu2 %749 }
 0x211   : > { %v923_v26 = vmul.f32 %v915_v12, %v907_v21  ;;  %v922_v30 = vmul.f32 %v914_v15, %v908_v22  ;;  %v754_v11 = vsel %vm334_vm6, %v1900_v53, %v750_v51  ;;  %v731_v17 = vperm.slane %v727_v37, 2 }
 0x212   : > { %1012 = vmatpush.msrb.mxu0 %v951_v23  ;;  %1032 = vmatpush.msrb.mxu1 %v952_v24  ;;  %v732_v22 = vperm.slane %v727_v37, 3  ;;  %v959_v24 = vld [vmem:[%s2039_s4] sm:$0xff] }
 0x213   : > { %1053 = vmatpush.msrb.mxu2 %v923_v26  ;;  %v820_v26 = vperm.slane %v817_v55, 1 }
 0x214   : > { %1013 = vmatpush.msrb.mxu0 %v921_v27  ;;  %1033 = vmatpush.msrb.mxu1 %v922_v30 }
 0x216   : > { %1014 = vmatpush.msrb.mxu0 %v891_v31  ;;  %v1929_v35 = vpop.permute.xlu0 %777 }
 0x217   : > { %v874_v36 = vpop.permute.xlu1 %873 }
 0x218   : > { %v877_v38 = vsel %vm466_vm2, %v874_v36, %v876_v56  ;;  %v878_v40 = vsel %vm466_vm2, %v1894_v44, %v874_v36  ;;  %v821_v56 = vperm.slane %v817_v55, 2  ;;  %v720_v0 = vpop.permute.xlu2 %719 }
 0x219   : > { %v892_v45 = vmul.f32 %v884_v32, %v878_v40  ;;  %v893_v46 = vmul.f32 %v885_v33, %v877_v38  ;;  %v724_v18 = vsel %vm303_vm7, %v1904_v60, %v720_v0 }
 0x21a   : > { %v739_v23 = vmul.f32 %v731_v17, %v724_v18 }
 0x21b   : > { %1034 = vmatpush.msrb.mxu1 %v892_v45  ;;  %1054 = vmatpush.msrb.mxu2 %v893_v46 }
 0x21e   : > { %v842_v48 = vpop.permute.xlu0 %841 }
 0x21f   : > { %v844_v49 = vpop.permute.xlu1 %843  ;;  %v849_v50 = vsel %vm434_vm3, %v840_v4, %v842_v48 }
 0x220   : > { %v847_v52 = vsel %vm434_vm3, %v844_v49, %v846_v1  ;;  %v848_v44 = vsel %vm434_vm3, %v842_v48, %v844_v49  ;;  %v861_v2 = vmul.f32 %v853_v47, %v849_v50  ;;  %v757_v1 = vld [vmem:[#allocation6 + $0x1] ss:$8 sm:$0xf]  ;;  %v776_v21 = vpop.permute.xlu2 %775  ;;  %v729_v49 = vperm.slane %v727_v37, 0 }
 0x221   : > { %v862_v3 = vmul.f32 %v854_v41, %v848_v44  ;;  %v863_v54 = vmul.f32 %v855_v43, %v847_v52  ;;  %v761_v9 = vperm.slane %v757_v1, 2  ;;  %v762_v10 = vperm.slane %v757_v1, 3 }
 0x222   : > { %1015 = vmatpush.msrb.mxu0 %v861_v2  ;;  %v785_v30 = vsel %vm366_vm5, %v776_v21, %v1929_v35  ;;  %v786_v38 = vsel %vm366_vm5, %v1927_v34, %v776_v21  ;;  %v760_v48 = vperm.slane %v757_v1, 1  ;;  %v730_v50 = vperm.slane %v727_v37, 1 }
 0x223   : > { %1035 = vmatpush.msrb.mxu1 %v862_v3  ;;  %1055 = vmatpush.msrb.mxu2 %v863_v54  ;;  %v769_v19 = vmul.f32 %v761_v9, %v754_v11 }
 0x224   : > { %1016 = vmatpush.msrb.mxu0 %v1810_v28 }
 0x225   : > { %1036 = vmatpush.msrb.mxu1 %v1812_v29  ;;  %1056 = vmatpush.msrb.mxu2 %v1841_v39  ;;  %v787_v39 = vld [vmem:[#allocation6 + $0x2] ss:$8 sm:$0xf] }
 0x226   : > { %v810_v59 = vpop.permute.xlu0 %809  ;;  %v791_v4 = vperm.slane %v787_v39, 2  ;;  %v792_v5 = vperm.slane %v787_v39, 3  ;;  %v789_v33 = vperm.slane %v787_v39, 0  ;;  %v790_v36 = vperm.slane %v787_v39, 1 }
 0x227   : > { %v812_v61 = vpop.permute.xlu1 %811  ;;  %v814_v28 = vsel %vm398_vm4, %v1892_v42, %v810_v59 }
 0x228   : > { %v813_v62 = vsel %vm398_vm4, %v810_v59, %v812_v61  ;;  %v829_v63 = vmul.f32 %v821_v56, %v814_v28  ;;  %v797_v41 = vmul.f32 %v789_v33, %v786_v38  ;;  %v798_v43 = vmul.f32 %v790_v36, %v785_v30  ;;  %v602_v59 = vpop.permute.xlu2 %601 }
 0x229   : > { %v830_v29 = vmul.f32 %v822_v57, %v813_v62  ;;  %v701_v39 = vadd.f32 %v700_v58, %v602_v59 }
 0x22a   : > { %1057 = vmatpush.msrb.mxu2 %v829_v63 }
 0x22b   : > { %1077 = vmatpush.msrb.mxu3 %v830_v29 }
 0x22e   : > { %v752_v6 = vpop.permute.xlu0 %751 }
 0x22f   : > { %v780_v8 = vpop.permute.xlu1 %779  ;;  %v753_v14 = vsel %vm334_vm6, %v750_v51, %v752_v6 }
 0x230   : > { %v783_v12 = vsel %vm366_vm5, %v780_v8, %v1927_v34  ;;  %v784_v13 = vsel %vm366_vm5, %v1929_v35, %v780_v8  ;;  %v770_v20 = vmul.f32 %v762_v10, %v753_v14  ;;  %v759_v34 = vperm.slane %v757_v1, 0 }
 0x231   : > { %v799_v15 = vmul.f32 %v791_v4, %v784_v13  ;;  %v800_v16 = vmul.f32 %v792_v5, %v783_v12  ;;  %v655_v10 = vadd.f32 %v654_v7, %v602_v59 }
 0x233   : > { %1058 = vmatpush.msrb.mxu2 %v799_v15  ;;  %1078 = vmatpush.msrb.mxu3 %v800_v16 }
 0x235   : > { %1059 = vmatpush.msrb.mxu2 %v769_v19  ;;  %1079 = vmatpush.msrb.mxu3 %v770_v20 }
 0x236   : > { %v722_v27 = vpop.permute.xlu0 %721 }
 0x237   : > { %v806_v31 = vpop.permute.xlu1 %805  ;;  %1060 = vmatpush.msrb.mxu2 %v739_v23  ;;  %v723_v32 = vsel %vm303_vm7, %v720_v0, %v722_v27 }
 0x238   : > { %v815_v40 = vsel %vm398_vm4, %v806_v31, %v1892_v42  ;;  %v816_v45 = vsel %vm398_vm4, %v812_v61, %v806_v31  ;;  %1223 = vmatmul.msk.f32.vlgmr.msrb.gmra.mxu2 %vm604_vm8, %v959_v24  ;;  %v740_v35 = vmul.f32 %v732_v22, %v723_v32  ;;  %v631_v61 = vpop.f32.mrf.mxu0 }
 0x239   : > { %v827_v46 = vmul.f32 %v819_v25, %v816_v45  ;;  %v828_v47 = vmul.f32 %v820_v26, %v815_v40  ;;  %v632_v9 = vadd.f32 %v631_v61, %v602_v59 }
 0x23a   : > { %1080 = vmatpush.msrb.mxu3 %v740_v35 }
 0x23b   : > { %1017 = vmatpush.msrb.mxu0 %v827_v46  ;;  %1037 = vmatpush.msrb.mxu1 %v828_v47 }
 0x23c   : > { %1224 = vmatmul.msk.f32.vlgmr.msrb.gmra.mxu3 %vm604_vm8, %v959_v24 }
 0x23d   : > { %1018 = vmatpush.msrb.mxu0 %v797_v41  ;;  %1038 = vmatpush.msrb.mxu1 %v798_v43 }
 0x23e   : > { %v746_v42 = vpop.permute.xlu0 %745 }
 0x23f   : > { %v716_v51 = vpop.permute.xlu1 %715  ;;  %v755_v52 = vsel %vm334_vm6, %v746_v42, %v1900_v53  ;;  %v756_v44 = vsel %vm334_vm6, %v752_v6, %v746_v42  ;;  %v677_v53 = vpop.f32.mrf.mxu2 }
 0x240   : > { %v725_v2 = vsel %vm303_vm7, %v716_v51, %v1904_v60  ;;  %v726_v3 = vsel %vm303_vm7, %v722_v27, %v716_v51  ;;  %v767_v54 = vmul.f32 %v759_v34, %v756_v44  ;;  %v768_v55 = vmul.f32 %v760_v48, %v755_v52 }
 0x241   : > { %v737_v56 = vmul.f32 %v729_v49, %v726_v3  ;;  %v738_v57 = vmul.f32 %v730_v50, %v725_v2  ;;  %v678_v28 = vadd.f32 %v677_v53, %v602_v59 }
 0x242   : > { %1019 = vmatpush.msrb.mxu0 %v767_v54  ;;  %1039 = vmatpush.msrb.mxu1 %v768_v55 }
 0x244   : > { %1020 = vmatpush.msrb.mxu0 %v737_v56  ;;  %1040 = vmatpush.msrb.mxu1 %v738_v57 }
 0x245   : > { %1221 = vmatmul.msk.f32.vlgmr.msrb.gmra.mxu0 %vm604_vm8, %v959_v24  ;;  %1222 = vmatmul.msk.f32.vlgmr.msrb.gmra.mxu1 %vm604_vm8, %v959_v24 }
 0x272   : > { %v1000_v60 = vpop.permute.xlu0 %999 }
 0x2bb   : > { %v1062_v62 = vpop.f32.mrf.mxu2 }
 0x2bc   : > { %v1063_v63 = vadd.f32 %v1062_v62, %v1000_v60 }
 0x2be   : > { %v1087_v29 = vadd.f32 %v1063_v63, %v678_v28 }
 0x2bf   : > { %v1082_v0 = vpop.f32.mrf.mxu3 }
 0x2c0   : > { %vm1091_vm13 = vcmp.gt.f32.partialorder %v1087_v29, 0.0  ;;  %v1095_v1 = vmul.f32 0.01, %v1087_v29  ;;  %v1083_v4 = vadd.f32 %v1082_v0, %v1000_v60 }
 0x2c2   : > { %v1099_v5 = vsel %vm1091_vm13, %v1087_v29, %v1095_v1  ;;  %v1088_v6 = vadd.f32 %v1083_v4, %v701_v39  ;;  %v1022_v37 = vpop.f32.mrf.mxu0  ;;  %v1042_v8 = vpop.f32.mrf.mxu1 }
 0x2c3   : > { %1103 = vst [vmem:[%s286_s25 + $0x10] sm:$0xff] %v1099_v5  ;;  %v1023_v11 = vadd.f32 %v1022_v37, %v1000_v60  ;;  %v1043_v12 = vadd.f32 %v1042_v8, %v1000_v60 }
 0x2c4   : > { %vm1092_vm14 = vcmp.gt.f32.partialorder %v1088_v6, 0.0  ;;  %v1096_v13 = vmul.f32 0.01, %v1088_v6 }
 0x2c5   : > { %v1085_v14 = vadd.f32 %v1023_v11, %v632_v9  ;;  %v1086_v15 = vadd.f32 %v1043_v12, %v655_v10 }
 0x2c6   : > { %v1100_v16 = vsel %vm1092_vm14, %v1088_v6, %v1096_v13 }
 0x2c7   : > { %1104 = vst [vmem:[%s286_s25 + $0x18] sm:$0xff] %v1100_v16  ;;  %vm1089_vm15 = vcmp.gt.f32.partialorder %v1085_v14, 0.0  ;;  %v1093_v17 = vmul.f32 0.01, %v1085_v14  ;;  %vm1090_vm0 = vcmp.gt.f32.partialorder %v1086_v15, 0.0 }
 0x2c8   : > { %v1094_v18 = vmul.f32 0.01, %v1086_v15 }
 0x2c9   : > { %v1097_v19 = vsel %vm1089_vm15, %v1085_v14, %v1093_v17 }
 0x2ca   : > { %1101 = vst [vmem:[%s286_s25] sm:$0xff] %v1097_v19  ;;  %v1098_v20 = vsel %vm1090_vm0, %v1086_v15, %v1094_v18 }
 0x2cb   : > { %1102 = vst [vmem:[%s286_s25 + $0x8] sm:$0xff] %v1098_v20 }
 0x2cc   : > { %1389 = shalt.err (!%p1386_p9)
}
 0x2cd   : > { %1238 = dma.vmem_to_hbm [thread:$0]  (%p1541_p13), %s1120_s28, 512, %s1122_s12, %s1106_s7  }
 0x2ce PF: > { %s1133_s17 = sand.u32 1, %s1420_s21   ;;  %p2047_p10 = scmp.ge.s32.totalorder %s1432_s24, 2 }
 0x2cf   : > { %s1134_s13 = scalar_lea.sflag [#allocation5], %s1133_s17 }
 0x2d0   : > { %p1249_p11 = pnand %p2047_p10, %p1546_p4 }
 0x2d2   : > { %p1250_p0 = pneg %p1249_p11 }
 0x2d4   : > { %1415 = dma.done.wait (%p1250_p0), %s1134_s13, 512  }
 0x2d5   : > { %1417 = vsyncadd (%p1250_p0), %s1134_s13, 4294966784  ;;  %p20_p2 = scmp.ge.s32.totalorder %s1521_s11, 4   ;;  %s2048_s21 = smov %s1424_s22 }
 0x2d6   : > { %s2049_s22 = smov %s1428_s23  ;;  %s2050_s23 = smov %s1533_s14 }
 0x2d7   : > { %s2051_s24 = smov %s1521_s11  ;;  %22 = sbr.rel (!%p20_p2) target bundleno = 6 (0x6), region = 100 }
 0x2dc   :  { %1140 = vsyncpa [#allocation4], 1 }
 0x2dd   :  { %1142 = vsyncpa [#allocation4 + $0x1], 1 }
 0x2de   :  { %1143 = vsyncpa [#allocation7], 1 }
 0x2df   :  { %1144 = vsyncpa [#allocation5], 1 }
 0x2e0   :  { %1146 = vsyncpa [#allocation5 + $0x1], 1 }

</bundles_post_ra>
